<compile_context>
chip_gen: v7x
topology: tpu7x:2x2x1
jax: 0.10.0
libtpu: 0.0.40
codegen_flags: <defaults>
</compile_context>

<pallas_src>
import jax
import jax.numpy as jnp
import numpy as np
from jax.experimental import pallas as pl
from jax.experimental.pallas import tpu as pltpu


def _round_to_f16_precision(x):
    """Round f32 values to the nearest float16 value (RNE), keep result in f32.

    Emulated with int32 bit ops (bitcast / shift / add / mask) so it lowers on
    Mosaic regardless of native fp16 support.  Exact on the f16 normal range;
    f16 subnormal/overflow behaviour is not modelled, which is irrelevant for
    non-negative pixel data in [0, 255]."""
    bits = pltpu.bitcast(x, jnp.int32)            # sign bit is 0 for our data
    round_bit = jnp.right_shift(bits, 13) & 1     # lowest kept mantissa bit
    bits = bits + 0x0FFF + round_bit              # round-to-nearest-even
    bits = bits & jnp.int32(-8192)                # clear low 13 mantissa bits
    return pltpu.bitcast(bits, jnp.float32)


_TAP_POS = ((0, 0), (0, 1), (1, 0), (1, 1))


def _make_debayer_kernel(taps, round_input):
    """taps: 3-tuple (R,G,B) of 4 Python floats = the 2x2 conv taps
    [k00, k01, k10, k11], baked in as compile-time constants.
    round_input: emulate the x.to(float16) quantization in-kernel (False when
    the source dtype is already exactly representable in fp16)."""

    def kernel(x_ref, o_ref):
        # x_ref: (TH, W) Bayer tile (native dtype);  o_ref: (3, TH, W) uint8.
        x = x_ref[...].astype(jnp.float32)        # upcast in-kernel
        if round_input:
            x = _round_to_f16_precision(x)        # x.to(float16), emulated
        TH, W = x.shape

        # Parity masks from 1-D iotas; jnp.where broadcasts them over (TH, W).
        row_odd = (jax.lax.broadcasted_iota(jnp.int32, (TH, 1), 0) & 1) == 1
        col_odd = (jax.lax.broadcasted_iota(jnp.int32, (1, W), 1) & 1) == 1

        # For output pixel (i, j) in its 2x2 Bayer block with base
        # (bi, bj) = (i - i%2, j - j%2), gather the four block samples
        # v[p][q] = x[bi+p, bj+q] via parity masks + XLU rolls.  Wrapped roll
        # values at tile edges are never selected by the masks because TH and
        # W are even and tile origins are even-aligned.
        a = jnp.where(row_odd, pltpu.roll(x, 1, 0), x)        # x[bi,   j]
        b = jnp.where(row_odd, x, pltpu.roll(x, TH - 1, 0))   # x[bi+1, j]

        def sample(p, q):                         # computed & consumed per tap
            base = a if p == 0 else b
            if q == 0:
                return jnp.where(col_odd, pltpu.roll(base, 1, 1), base)
            return jnp.where(col_odd, base, pltpu.roll(base, W - 1, 1))

        for c in range(3):                        # R, G, B
            nonzero = [(t, pq) for t, pq in zip(taps[c], _TAP_POS) if t != 0.0]
            if not nonzero:
                o_ref[c] = jnp.zeros((TH, W), jnp.uint8)
                continue
            acc = None
            for t, (p, q) in nonzero:
                term = sample(p, q)
                if t != 1.0:
                    term = jnp.float32(t) * term
                acc = term if acc is None else acc + term
            # Torch's conv output would be fp16.  "Copy" channels (single 1.0
            # tap, e.g. R/B in RGGB) are already fp16-exact -> skip re-round.
            if not (len(nonzero) == 1 and nonzero[0][0] == 1.0):
                acc = _round_to_f16_precision(acc)
            # .to(uint8): truncate toward zero; values stay in [0, 255] since
            # the fixed Debayer2x2 taps are non-negative and sum to 1.
            o_ref[c] = acc.astype(jnp.int32).astype(jnp.uint8)

    return kernel


def _pick_tile_h(H, W, in_bytes, n_images, budget_bytes=20 << 20):
    """VMEM-budget-aware tile height.

    Per-step footprint estimate (bytes/pixel):
      2 * in_bytes : double-buffered input tile
      2 * 3        : double-buffered 3-channel uint8 output tile
      5 * 4        : ~5 concurrently-live full-tile f32 temporaries (spill)
    Picks the largest multiple of 32 dividing H that fits a ~20 MiB budget
    (well inside the default/explicit scoped VMEM on v5e/v6e/v7x), and then
    guarantees >= 2 grid steps so both v7x TensorCores get parallel work."""
    per_px = 2 * in_bytes + 2 * 3 + 5 * 4
    cands = [th for th in range(32, H + 1, 32) if H % th == 0]
    if not cands:
        # H not a multiple of 32: fall back to full height (H is even).  The
        # uint8 stores become partially masked; prefer padding H upstream.
        return H
    fits = [th for th in cands if th * W * per_px <= budget_bytes]
    th = max(fits) if fits else min(cands)
    if n_images * (H // th) < 2:                  # keep both v7x cores busy
        smaller = [t for t in cands if H // t >= 2]
        if smaller:
            in_budget = [t for t in smaller if t * W * per_px <= budget_bytes]
            th = max(in_budget) if in_budget else min(smaller)
    return th


def to_half_debayer(x, w, tile_h=None):
    """ToHalf(Debayer2x2).forward: cast to fp16, 2x2 debayer, cast to uint8.

    x: (N, 1, H, W) Bayer mosaic (any float or 8/16-bit integer dtype);
    w: (3, 1, 2, 2) fixed debayer kernel.  Returns (N, 3, H, W) uint8."""
    N, C, H, W = x.shape
    assert C == 1 and H % 2 == 0 and W % 2 == 0

    in_bytes = jnp.dtype(x.dtype).itemsize
    TH = _pick_tile_h(H, W, in_bytes, N) if tile_h is None else tile_h
    assert H % TH == 0 and TH % 2 == 0
    assert TH == H or TH % 32 == 0, "uint8 output tiles need TH % 32 == 0"

    # fp16 quantization is a no-op for these source dtypes (exact in fp16
    # over [0, 255]); skip the in-kernel rounding sequence entirely.
    exact_in_f16 = (jnp.dtype(jnp.float16), jnp.dtype(jnp.bfloat16),
                    jnp.dtype(jnp.uint8), jnp.dtype(jnp.int8))
    round_input = jnp.dtype(x.dtype) not in exact_in_f16

    # Fixed taps -> Python constants baked into the kernel (zero taps folded).
    taps = tuple(
        tuple(float(t) for t in np.asarray(w, np.float32)[c, 0].reshape(-1))
        for c in range(3)
    )
    kernel = _make_debayer_kernel(taps, round_input)

    return pl.pallas_call(
        kernel,
        out_shape=jax.ShapeDtypeStruct((N, 3, H, W), jnp.uint8),
        grid=(N, H // TH),
        in_specs=[
            pl.BlockSpec((pl.Squeezed(), pl.Squeezed(), TH, W),
                         lambda n, h: (n, 0, h, 0)),
        ],
        out_specs=pl.BlockSpec((pl.Squeezed(), 3, TH, W),
                               lambda n, h: (n, 0, h, 0)),
        # Tiles are budgeted to ~20 MiB per step (I/O double buffers plus
        # spilled full-tile temporaries); 48 MiB scoped VMEM gives headroom on
        # every generation (v5e/v6e: 128 MiB physical, v7x: 64 MiB).
        compiler_params=pltpu.CompilerParams(
            dimension_semantics=("parallel", "parallel"),
            vmem_limit_bytes=48 * 1024 * 1024),
    )(x)  # NOTE: no host-side cast -- the kernel reads the native dtype.


def _ref_forward(x, w):
    """Pure-JAX reference of ToHalf(Debayer2x2) for validation."""
    xh = x.astype(jnp.float16).astype(jnp.float32)
    taps = [xh[:, 0, p::2, q::2] for p in (0, 1) for q in (0, 1)]
    chans = []
    for c in range(3):
        y = (w[c, 0, 0, 0] * taps[0] + w[c, 0, 0, 1] * taps[1] +
             w[c, 0, 1, 0] * taps[2] + w[c, 0, 1, 1] * taps[3])
        y = jnp.repeat(jnp.repeat(y, 2, axis=-2), 2, axis=-1)   # nearest x2
        chans.append(y)
    out = jnp.stack(chans, axis=1)
    return out.astype(jnp.float16).astype(jnp.uint8)


if __name__ == "__main__":
    key = jax.random.PRNGKey(0)
    # Bayer mosaic is single-channel.  Small but multi-tile shape: H=64 with
    # tile_h=32 exercises 2 H-tiles per image; W lane-aligned (mult. of 128).
    N, H, W = 2, 64, 256
    k1, k2 = jax.random.split(key)
    x_f32 = jax.random.uniform(k1, (N, 1, H, W), jnp.float32, 0.0, 255.0)
    x_u8 = jax.random.randint(k2, (N, 1, H, W), 0, 256, jnp.int32).astype(jnp.uint8)

    # pytorch-debayer Debayer2x2 fixed kernel (RGGB): R = top-left,
    # G = mean of the two greens, B = bottom-right.
    w = jnp.array([[1.0, 0.0], [0.0, 0.0],
                   [0.0, 0.5], [0.5, 0.0],
                   [0.0, 0.0], [0.0, 1.0]], jnp.float32).reshape(3, 1, 2, 2)

    cases = (
        ("f32 / auto-tile", x_f32, None),   # in-kernel fp16 round path
        ("f32 / tile_h=32", x_f32, 32),     # multi-tile per image
        ("uint8 / auto-tile", x_u8, None),  # narrow-dtype read, round skipped
    )
    for name, x, th in cases:
        out = jax.block_until_ready(to_half_debayer(x, w, tile_h=th))
        assert out.shape == (N, 3, H, W), (name, out.shape)
        assert out.dtype == jnp.uint8, (name, out.dtype)
        ref = np.asarray(_ref_forward(x, w))
        diff = np.abs(np.asarray(out).astype(np.int32) - ref.astype(np.int32))
        assert diff.max() <= 1, f"{name}: max abs diff vs reference: {diff.max()}"

    print("KERNEL_OK")
</pallas_src>

<mosaic_0001>
module attributes {stable_mosaic.version = 11 : i64} {
  func.func @kernel(%arg0: i32, %arg1: i32, %arg2: memref<1x1x64x256xf32, #tpu.memory_space<vmem>>, %arg3: memref<1x3x64x256xi8, #tpu.memory_space<vmem>>) attributes {dimension_semantics = [#tpu.dimension_semantics<parallel>, #tpu.dimension_semantics<parallel>], iteration_bounds = array<i64: 2, 1>, scalar_prefetch = 0 : i64, scratch_operands = 0 : i64, tpu.core_type = #tpu.core_type<tc>, window_params = [{transform_indices = @transform_0, window_bounds = array<i64: 1, 1, 64, 256>}, {transform_indices = @transform_1, window_bounds = array<i64: 1, 3, 64, 256>}]} {
    %c0 = arith.constant 0 : index
    %c0_0 = arith.constant 0 : index
    %c0_1 = arith.constant 0 : index
    %c0_2 = arith.constant 0 : index
    %0 = vector.load %arg2[%c0, %c0_0, %c0_1, %c0_2] : memref<1x1x64x256xf32, #tpu.memory_space<vmem>>, vector<1x1x64x256xf32>
    %1 = vector.shape_cast %0 : vector<1x1x64x256xf32> to vector<64x256xf32>
    %2 = tpu.bitcast %1 : vector<64x256xf32> -> vector<64x256xi32>
    %c13_i32 = arith.constant 13 : i32
    %3 = vector.broadcast %c13_i32 : i32 to vector<64x256xi32>
    %4 = arith.shrsi %2, %3 : vector<64x256xi32>
    %c1_i32 = arith.constant 1 : i32
    %5 = vector.broadcast %c1_i32 : i32 to vector<64x256xi32>
    %6 = arith.andi %4, %5 : vector<64x256xi32>
    %c4095_i32 = arith.constant 4095 : i32
    %7 = vector.broadcast %c4095_i32 : i32 to vector<64x256xi32>
    %8 = arith.addi %2, %7 : vector<64x256xi32>
    %9 = arith.addi %8, %6 : vector<64x256xi32>
    %c-8192_i32 = arith.constant -8192 : i32
    %10 = vector.broadcast %c-8192_i32 : i32 to vector<64x256xi32>
    %11 = arith.andi %9, %10 : vector<64x256xi32>
    %12 = tpu.bitcast %11 : vector<64x256xi32> -> vector<64x256xf32>
    %13 = tpu.iota {dimensions = array<i32: 0>} : vector<64x1xi32>
    %c1_i32_3 = arith.constant 1 : i32
    %14 = vector.broadcast %c1_i32_3 : i32 to vector<64x1xi32>
    %15 = arith.andi %13, %14 : vector<64x1xi32>
    %c1_i32_4 = arith.constant 1 : i32
    %16 = vector.broadcast %c1_i32_4 : i32 to vector<64x1xi32>
    %17 = arith.cmpi eq, %15, %16 : vector<64x1xi32>
    %18 = tpu.iota {dimensions = array<i32: 1>} : vector<1x256xi32>
    %c1_i32_5 = arith.constant 1 : i32
    %19 = vector.broadcast %c1_i32_5 : i32 to vector<1x256xi32>
    %20 = arith.andi %18, %19 : vector<1x256xi32>
    %c1_i32_6 = arith.constant 1 : i32
    %21 = vector.broadcast %c1_i32_6 : i32 to vector<1x256xi32>
    %22 = arith.cmpi eq, %20, %21 : vector<1x256xi32>
    %c1_i32_7 = arith.constant 1 : i32
    %23 = tpu.dynamic_rotate %12 by %c1_i32_7 dim 0 : vector<64x256xf32>, i32 -> vector<64x256xf32>
    %24 = vector.shape_cast %17 : vector<64x1xi1> to vector<64x1xi1>
    %25 = vector.broadcast %24 : vector<64x1xi1> to vector<64x256xi1>
    %26 = arith.select %25, %23, %12 : vector<64x256xi1>, vector<64x256xf32>
    %c63_i32 = arith.constant 63 : i32
    %27 = tpu.dynamic_rotate %12 by %c63_i32 dim 0 : vector<64x256xf32>, i32 -> vector<64x256xf32>
    %28 = vector.shape_cast %17 : vector<64x1xi1> to vector<64x1xi1>
    %29 = vector.broadcast %28 : vector<64x1xi1> to vector<64x256xi1>
    %30 = arith.select %29, %12, %27 : vector<64x256xi1>, vector<64x256xf32>
    %c1_i32_8 = arith.constant 1 : i32
    %31 = tpu.dynamic_rotate %26 by %c1_i32_8 dim 1 : vector<64x256xf32>, i32 -> vector<64x256xf32>
    %32 = vector.shape_cast %22 : vector<1x256xi1> to vector<1x256xi1>
    %33 = vector.broadcast %32 : vector<1x256xi1> to vector<64x256xi1>
    %34 = arith.select %33, %31, %26 : vector<64x256xi1>, vector<64x256xf32>
    %35 = arith.fptosi %34 : vector<64x256xf32> to vector<64x256xi32>
    %36 = arith.trunci %35 : vector<64x256xi32> to vector<64x256xi8>
    %c0_9 = arith.constant 0 : index
    %c0_10 = arith.constant 0 : index
    %c0_11 = arith.constant 0 : index
    %c0_12 = arith.constant 0 : index
    %37 = vector.load %arg3[%c0_9, %c0_10, %c0_11, %c0_12] : memref<1x3x64x256xi8, #tpu.memory_space<vmem>>, vector<1x1x64x256xi8>
    %38 = vector.shape_cast %37 : vector<1x1x64x256xi8> to vector<64x256xi8>
    %39 = vector.shape_cast %36 : vector<64x256xi8> to vector<1x1x64x256xi8>
    tpu.vector_store %arg3[%c0_9, %c0_10, %c0_11, %c0_12], %39 {strides = array<i32>} : memref<1x3x64x256xi8, #tpu.memory_space<vmem>>, vector<1x1x64x256xi8>,
    %c255_i32 = arith.constant 255 : i32
    %40 = tpu.dynamic_rotate %26 by %c255_i32 dim 1 : vector<64x256xf32>, i32 -> vector<64x256xf32>
    %41 = vector.shape_cast %22 : vector<1x256xi1> to vector<1x256xi1>
    %42 = vector.broadcast %41 : vector<1x256xi1> to vector<64x256xi1>
    %43 = arith.select %42, %26, %40 : vector<64x256xi1>, vector<64x256xf32>
    %cst = arith.constant 5.000000e-01 : f32
    %44 = vector.broadcast %cst : f32 to vector<64x256xf32>
    %45 = arith.mulf %44, %43 : vector<64x256xf32>
    %c1_i32_13 = arith.constant 1 : i32
    %46 = tpu.dynamic_rotate %30 by %c1_i32_13 dim 1 : vector<64x256xf32>, i32 -> vector<64x256xf32>
    %47 = vector.shape_cast %22 : vector<1x256xi1> to vector<1x256xi1>
    %48 = vector.broadcast %47 : vector<1x256xi1> to vector<64x256xi1>
    %49 = arith.select %48, %46, %30 : vector<64x256xi1>, vector<64x256xf32>
    %cst_14 = arith.constant 5.000000e-01 : f32
    %50 = vector.broadcast %cst_14 : f32 to vector<64x256xf32>
    %51 = arith.mulf %50, %49 : vector<64x256xf32>
    %52 = arith.addf %45, %51 : vector<64x256xf32>
    %53 = tpu.bitcast %52 : vector<64x256xf32> -> vector<64x256xi32>
    %c13_i32_15 = arith.constant 13 : i32
    %54 = vector.broadcast %c13_i32_15 : i32 to vector<64x256xi32>
    %55 = arith.shrsi %53, %54 : vector<64x256xi32>
    %c1_i32_16 = arith.constant 1 : i32
    %56 = vector.broadcast %c1_i32_16 : i32 to vector<64x256xi32>
    %57 = arith.andi %55, %56 : vector<64x256xi32>
    %c4095_i32_17 = arith.constant 4095 : i32
    %58 = vector.broadcast %c4095_i32_17 : i32 to vector<64x256xi32>
    %59 = arith.addi %53, %58 : vector<64x256xi32>
    %60 = arith.addi %59, %57 : vector<64x256xi32>
    %c-8192_i32_18 = arith.constant -8192 : i32
    %61 = vector.broadcast %c-8192_i32_18 : i32 to vector<64x256xi32>
    %62 = arith.andi %60, %61 : vector<64x256xi32>
    %63 = tpu.bitcast %62 : vector<64x256xi32> -> vector<64x256xf32>
    %64 = arith.fptosi %63 : vector<64x256xf32> to vector<64x256xi32>
    %65 = arith.trunci %64 : vector<64x256xi32> to vector<64x256xi8>
    %c0_19 = arith.constant 0 : index
    %c1 = arith.constant 1 : index
    %c0_20 = arith.constant 0 : index
    %c0_21 = arith.constant 0 : index
    %66 = vector.load %arg3[%c0_19, %c1, %c0_20, %c0_21] : memref<1x3x64x256xi8, #tpu.memory_space<vmem>>, vector<1x1x64x256xi8>
    %67 = vector.shape_cast %66 : vector<1x1x64x256xi8> to vector<64x256xi8>
    %68 = vector.shape_cast %65 : vector<64x256xi8> to vector<1x1x64x256xi8>
    tpu.vector_store %arg3[%c0_19, %c1, %c0_20, %c0_21], %68 {strides = array<i32>} : memref<1x3x64x256xi8, #tpu.memory_space<vmem>>, vector<1x1x64x256xi8>,
    %c255_i32_22 = arith.constant 255 : i32
    %69 = tpu.dynamic_rotate %30 by %c255_i32_22 dim 1 : vector<64x256xf32>, i32 -> vector<64x256xf32>
    %70 = vector.shape_cast %22 : vector<1x256xi1> to vector<1x256xi1>
    %71 = vector.broadcast %70 : vector<1x256xi1> to vector<64x256xi1>
    %72 = arith.select %71, %30, %69 : vector<64x256xi1>, vector<64x256xf32>
    %73 = arith.fptosi %72 : vector<64x256xf32> to vector<64x256xi32>
    %74 = arith.trunci %73 : vector<64x256xi32> to vector<64x256xi8>
    %c0_23 = arith.constant 0 : index
    %c2 = arith.constant 2 : index
    %c0_24 = arith.constant 0 : index
    %c0_25 = arith.constant 0 : index
    %75 = vector.load %arg3[%c0_23, %c2, %c0_24, %c0_25] : memref<1x3x64x256xi8, #tpu.memory_space<vmem>>, vector<1x1x64x256xi8>
    %76 = vector.shape_cast %75 : vector<1x1x64x256xi8> to vector<64x256xi8>
    %77 = vector.shape_cast %74 : vector<64x256xi8> to vector<1x1x64x256xi8>
    tpu.vector_store %arg3[%c0_23, %c2, %c0_24, %c0_25], %77 {strides = array<i32>} : memref<1x3x64x256xi8, #tpu.memory_space<vmem>>, vector<1x1x64x256xi8>,
    return
  }
  func.func @transform_0(%arg0: i32, %arg1: i32) -> (i32, i32, i32, i32) {
    %c0_i32 = arith.constant 0 : i32
    %c0_i32_0 = arith.constant 0 : i32
    %c0_i32_1 = arith.constant 0 : i32
    return %arg0, %c0_i32, %arg1, %c0_i32_0 : i32, i32, i32, i32
  }
  func.func @transform_1(%arg0: i32, %arg1: i32) -> (i32, i32, i32, i32) {
    %c0_i32 = arith.constant 0 : i32
    %c0_i32_0 = arith.constant 0 : i32
    %c0_i32_1 = arith.constant 0 : i32
    return %arg0, %c0_i32, %arg1, %c0_i32_0 : i32, i32, i32, i32
  }
}

</mosaic_0001>

<bundles_post_ra>
// kernel: tpu_custom_call.1
= control target key start
LH: loop header
LB: loop body
LE: loop exit
PB: predicated region body
PF: predicated region fallthrough
CT: control target
= control target key end

     0   :  { %6 = vsyncpa [#allocation3], 0  ;;  %s2496_s0 = inlined_call_operand.hbm [shape: f32[2,1,64,256], index: 0, kind: input, shape index: {}]   ;;  %s2497_s1 = inlined_call_operand.hbm [shape: u8[2,3,64,256], index: 1, kind: output, shape index: {}]  }
   0x1   :  { %8 = vsyncpa [#allocation3 + $0x1], 0 }
   0x2   :  { %9 = vsyncpa [#allocation4], 0 }
   0x3   :  { %11 = vsyncpa [#allocation4 + $0x1], 0  ;;  %s1373_s6 = smov 0   ;;  %s1375_s7 = smov 0  }
   0x4   :  { %s1377_s8 = smov 0   ;;  %s1379_s9 = smov 0  }
   0x5   :  { %s1381_s10 = smov 0   ;;  %s1383_s11 = smov 0  }
   0x6 LB: > { %s1054_s12 = sadd.s32 4294967295, %s1353_s11   ;;  %s1055_s13 = sadd.s32 4294967294, %s1353_s11   ;;  %s1353_s11 = sphi %s1383_s11, %s17_s11   ;;  %s1349_s10 = sphi %s1381_s10, %s2532_s10   ;;  %s1345_s9 = sphi %s1379_s9, %s2531_s9   ;;  %s1341_s8 = sphi %s1377_s8, %s2530_s8   ;;  %s1337_s7 = sphi %s1375_s7, %s2529_s7   ;;  %s1333_s6 = sphi %s1373_s6, %s2528_s6  }
   0x7   : > { %s29_s14 = sadd.s32 1, %s1349_s10  ;;  %s38_s15 = sadd.s32 1, %s1341_s8 }
   0x8   : > { %p31_p0 = scmp.ge.s32.totalorder %s29_s14, 2  ;;  %p45_p1 = scmp.ne.s32.totalorder %s1341_s8, %s1337_s7 }
   0x9   : > { %p46_p2 = scmp.eq.s32.totalorder %s1353_s11, 0  ;;  %p51_p3 = scmp.ne.s32.totalorder %s1337_s7, %s1333_s6 }
   0xa   : > { %s2534_s14 = smov (%p31_p0, %s29_s14), 0  ;;  %p52_p5 = scmp.eq.s32.totalorder %s1054_s12, 0 }
   0xb   : > { %p1414_p4 = por %p46_p2, %p45_p1  ;;  %s33_s17 = ssub.s32 %s1349_s10, %s2534_s14 }
   0xc   : > { %p77_p6 = scmp.eq.s32.totalorder %s1054_s12, 1  ;;  %p36_p7 = scmp.eq.s32.totalorder %s33_s17, 0 }
   0xd   : > { %p1420_p8 = por %p52_p5, %p51_p3  ;;  %p83_p10 = scmp.eq.s32.totalorder %s1055_s13, 1 }
   0xe   : > { %p1424_p9 = por %p77_p6, %p45_p1  ;;  %p1185_p13 = scmp.lt.s32.totalorder %s1353_s11, 2 }
   0xf   : > { %s1429_s20 = scalar_select %p36_p7, %s1341_s8, %s38_s15  }
  0x10   : > { %s2501_s19 = scalar_select %p1424_p9, 1, 0 }
  0x11   : > { %p1431_p11 = por %p83_p10, %p51_p3  ;;  %s103_s22 = sand.u32 1, %s1341_s8  }
  0x12   : > { %s1058_s23 = sshll.u32 %s103_s22, 7  ;;  %s1074_s24 = sshll.u32 %s1349_s10, 11 }
  0x13   : > { %s2502_s21 = scalar_select %p1431_p11, 1, 0 }
  0x14   : > { %s1442_s27 = scalar_lea.hbm %s2496_s0, %s1074_s24  ;;  %s107_s28 = scalar_lea.vmem [#allocation2], %s1058_s23 }
  0x15   : > { %s117_s29 = sshll.u32 %s107_s28, 4  ;;  %p1448_p0 = pnand %p1185_p13, %p1414_p4  ;;  %s1444_s29 = int_to_ptr.vmem [resolvable:$true] %s117_s29 }
  0x16   : > { %s1453_s2 = scalar_lea.sflag [#allocation3], %s103_s22  ;;  %s1241_s3 = scalar_lea.hbm %s1442_s27, 2048 }
  0x17   : > { %p1242_p2 = scmp.ne.s32.totalorder %s1442_s27, %s1241_s3  ;;  %p1243_p3 = pneg %p1448_p0 }
  0x18   : > { %s1246_s12 = scalar_lea.hbm %s2496_s0, 4096  ;;  %p1247_p4 = scmp.lt.u32.totalorder %s1442_s27, %s2496_s0 }
  0x19   : > { %p1244_p5 = pnand %p1243_p3, %p1242_p2  ;;  %p1248_p7 = scmp.lt.u32.totalorder %s1246_s12, %s1241_s3 }
  0x1a   : > { %p1250_p13 = scmp.lt.u32.totalorder %s1241_s3, %s1442_s27 }
  0x1b   : > { %p1245_p6 = pneg %p1244_p5  ;;  %p1249_p10 = por %p1248_p7, %p1247_p4 }
  0x1d   : > { %p1251_p12 = por %p1250_p13, %p1249_p10 }
  0x1f   : > { %p1252_p1 = pnand %p1251_p12, %p1245_p6 }
  0x21   : > { %1255 = shalt.err (!%p1252_p1)
}
  0x22   : > { %s1256_s16 = scalar_lea.vmem %s1444_s29, 2048  ;;  %s1355_s17 = smov [#allocation2]  }
  0x23   : > { %p1257_p2 = scmp.ne.s32.totalorder %s1444_s29, %s1256_s16  ;;  %s1261_s22 = sshll.u32 %s1355_s17, 4  ;;  %s1262_s22 = int_to_ptr.vmem [resolvable:$false] %s1261_s22 }
  0x24   : > { %s1263_s23 = scalar_lea.vmem %s1262_s22, 4096  ;;  %p1264_p9 = scmp.lt.s32.totalorder %s1444_s29, %s1262_s22 }
  0x25   : > { %p1259_p5 = pnand %p1257_p2, %p1243_p3  ;;  %p1265_p4 = scmp.lt.s32.totalorder %s1263_s23, %s1256_s16 }
  0x27   : > { %p1260_p11 = pneg %p1259_p5  ;;  %p1266_p7 = por %p1265_p4, %p1264_p9 }
  0x29   : > { %p1267_p10 = pnand %p1266_p7, %p1260_p11 }
  0x2b   : > { %1270 = shalt.err (!%p1267_p10)
}
  0x2c   : > { %s1356_s24 = smov 256   ;;  %s1357_s25 = smov 16  }
  0x2d   : > { %1180 = dma.hbm_to_vmem [thread:$0]  (!%p1448_p0), %s1442_s27, 2048, %s1444_s29, %s1453_s2, %s1356_s24, %s1356_s24, %s1357_s25  }
  0x2e   : > { %p125_p12 = scmp.lt.s32.totalorder %s1353_s11, 3  ;;  %p2504_p1 = scmp.ge.s32.totalorder %s1353_s11, 1 }
  0x30   : > { %p126_p3 = pnand %p2504_p1, %p125_p12 }
  0x31   : > { %s1485_s26 = sand.u32 (!%p126_p3), 1, %s1337_s7  }
  0x32   : > { %129 = sbr.rel (%p126_p3) target bundleno = 359 (0x167), region = 24  ;;  %s1062_s28 = sshll.u32 (!%p126_p3), %s1485_s26, 7 }
  0x33   : > { %s132_s3 = scalar_lea.sflag (!%p126_p3), [#allocation3], %s1485_s26  ;;  %s1489_s4 = scalar_lea.vmem (!%p126_p3), [#allocation2], %s1062_s28 }
  0x39   : > { %1324 = dma.done.wait (%p1420_p8), %s132_s3, 2048  }
  0x3a   : > { %1326 = vsyncadd (%p1420_p8), %s132_s3, 4294965248  ;;  %v284_v0 = vlaneseq  ;;  %v158_v6 = vld [vmem:[%s1489_s4 + $0x10] sm:$0xff]  ;;  %v160_v7 = vld [vmem:[%s1489_s4 + $0x20] sm:$0xff]  ;;  %s1358_s18 = smov 1   ;;  %s1359_s27 = smov 127  }
  0x3b   : > { %v156_v8 = vld [vmem:[%s1489_s4] sm:$0xff]  ;;  %v190_v11 = vshra.s32 %v158_v6, 13  ;;  %v192_v12 = vshra.s32 %v160_v7, 13  ;;  %v222_v13 = vadd.s32 4095, %v158_v6  ;;  %v224_v14 = vadd.s32 4095, %v160_v7  ;;  %v170_v15 = vld [vmem:[%s1489_s4 + $0x70] sm:$0xff] }
  0x3c   : > { %v1496_v1 = vshrl.u32 %v284_v0, 7  ;;  %v162_v16 = vld [vmem:[%s1489_s4 + $0x30] sm:$0xff]  ;;  %v188_v18 = vshra.s32 %v156_v8, 13  ;;  %v202_v19 = vshra.s32 %v170_v15, 13  ;;  %v220_v24 = vadd.s32 4095, %v156_v8  ;;  %v164_v26 = vld [vmem:[%s1489_s4 + $0x40] sm:$0xff] }
  0x3d   : > { %v206_v22 = vand.u32 1, %v190_v11  ;;  %v208_v23 = vand.u32 1, %v192_v12  ;;  %v234_v25 = vadd.s32 4095, %v170_v15  ;;  %v194_v29 = vshra.s32 %v162_v16, 13  ;;  %v166_v31 = vld [vmem:[%s1489_s4 + $0x50] sm:$0xff]  ;;  %v168_v60 = vld [vmem:[%s1489_s4 + $0x60] sm:$0xff] }
  0x3e   : > { %v287_v2 = vadd.s32 16, %v1496_v1  ;;  %v293_v3 = vand.u32 1, %v1496_v1  ;;  %v288_v4 = vadd.s32 24, %v1496_v1  ;;  %vm332_vm0 = vcmp.lt.s32.totalorder %v1496_v1, 1  ;;  %v157_v11 = vld [vmem:[%s1489_s4 + $0x8] sm:$0xff]  ;;  %v159_v12 = vld [vmem:[%s1489_s4 + $0x18] sm:$0xff] }
  0x3f   : > { %v286_v10 = vadd.s32 8, %v1496_v1  ;;  %v290_v21 = vadd.s32 40, %v1496_v1  ;;  %v204_v27 = vand.u32 1, %v188_v18  ;;  %v218_v28 = vand.u32 1, %v202_v19  ;;  %s1075_s29 = smul.u32 96, %s1485_s26  ;;  %p2525_p9 = scmp.ne.s32.totalorder %s2501_s19, 0 }
  0x40   : > { %v295_v5 = vand.u32 1, %v287_v2  ;;  %v296_v9 = vand.u32 1, %v288_v4  ;;  %vm1512_vm2 = vcmp.eq.s32.totalorder %v293_v3, 1  ;;  %v226_v30 = vadd.s32 4095, %v162_v16  ;;  %s1172_s2 = smul.u32 1536, %s1345_s9  ;;  %s951_s9 = scalar_lea.sflag [#allocation4], %s1485_s26 }
  0x41   : > { %v238_v32 = vadd.s32 %v222_v13, %v206_v22  ;;  %v240_v33 = vadd.s32 %v224_v14, %v208_v23  ;;  %v294_v35 = vand.u32 1, %v286_v10  ;;  %v236_v36 = vadd.s32 %v220_v24, %v204_v27  ;;  %s2067_s30 = scalar_lea.vmem [#allocation5], %s1075_s29  ;;  %s1360_s17 = smov [#allocation5]  }
  0x42   : > { %vm1508_vm1 = vcmp.eq.s32.totalorder %v295_v5, 1  ;;  %vm1519_vm3 = vcmp.eq.s32.totalorder %v296_v9, 1  ;;  %v250_v37 = vadd.s32 %v234_v25, %v218_v28  ;;  %v210_v38 = vand.u32 1, %v194_v29  ;;  %s967_s5 = sshll.u32 %s2067_s30, 4  ;;  %s2443_s15 = scalar_lea.hbm %s2497_s1, %s1172_s2  ;;  %s2445_s5 = int_to_ptr.vmem [resolvable:$true] %s967_s5 }
  0x43   : > { %v196_v39 = vshra.s32 %v164_v26, 13  ;;  %v1523_v40 = vand.u32 4294959104, %v238_v32  ;;  %v1525_v41 = vand.u32 4294959104, %v240_v33  ;;  %vm1527_vm4 = vcmp.eq.s32.totalorder %v294_v35, 1  ;;  %s1271_s16 = scalar_lea.vmem %s2445_s5, 1536  ;;  %s1275_s22 = sshll.u32 %s1360_s17, 4  ;;  %s1276_s22 = int_to_ptr.vmem [resolvable:$false] %s1275_s22 }
  0x44   : > { %v198_v43 = vshra.s32 %v166_v31, 13  ;;  %v1531_v44 = vand.u32 4294959104, %v236_v36  ;;  %v1533_v45 = vand.u32 4294959104, %v250_v37  ;;  %v242_v46 = vadd.s32 %v226_v30, %v210_v38  ;;  %v161_v37 = vld [vmem:[%s1489_s4 + $0x28] sm:$0xff]  ;;  %v163_v38 = vld [vmem:[%s1489_s4 + $0x38] sm:$0xff]  ;;  %p1272_p8 = scmp.ne.s32.totalorder %s2445_s5, %s1271_s16  ;;  %s1277_s23 = scalar_lea.vmem %s1276_s22, 3072 }
  0x45   : > { %v212_v47 = vand.u32 1, %v196_v39  ;;  %v318_v48 = vrot.slane %v1523_v40, 7  ;;  %v320_v49 = vrot.slane %v1525_v41, 7  ;;  %v228_v51 = vadd.s32 4095, %v164_v26  ;;  %p1278_p6 = scmp.lt.s32.totalorder %s2445_s5, %s1276_s22  ;;  %p1279_p13 = scmp.lt.s32.totalorder %s1277_s23, %s1271_s16 }
  0x46   : > { %v214_v50 = vand.u32 1, %v198_v43  ;;  %v316_v52 = vrot.slane %v1531_v44, 7  ;;  %v330_v53 = vrot.slane %v1533_v45, 7  ;;  %v1539_v54 = vand.u32 4294959104, %v242_v46  ;;  %p1273_p11 = pnand %p1272_p8, %p2525_p9 }
  0x47   : > { %v230_v55 = vadd.s32 4095, %v166_v31  ;;  %v343_v56 = vsel %vm332_vm0, %v318_v48, %v320_v49  ;;  %v244_v57 = vadd.s32 %v228_v51, %v212_v47  ;;  %v298_v58 = vand.u32 1, %v290_v21  ;;  %v171_v31 = vld [vmem:[%s1489_s4 + $0x78] sm:$0xff]  ;;  %p1280_p2 = por %p1279_p13, %p1278_p6 }
  0x48   : > { %v289_v59 = vadd.s32 32, %v1496_v1  ;;  %v1548_v61 = vsel %vm1508_vm1, %v343_v56, %v1525_v41  ;;  %v347_v62 = vsel %vm332_vm0, %v330_v53, %v316_v52  ;;  %v322_v63 = vrot.slane %v1539_v54, 7  ;;  %p1274_p0 = pneg %p1273_p11 }
  0x49   : > { %v345_v2 = vsel %vm332_vm0, %v316_v52, %v318_v48  ;;  %434 = vrot.lane.b32.xlu1 %v1548_v61, %s1358_s18  ;;  %v1562_v3 = vsel %vm1512_vm2, %v347_v62, %v1531_v44  ;;  %v246_v5 = vadd.s32 %v230_v55, %v214_v50  ;;  %v1569_v6 = vand.u32 4294959104, %v244_v57 }
  0x4a   : > { %v1567_v4 = vsel %vm1527_vm4, %v345_v2, %v1523_v40  ;;  %430 = vrot.lane.b32.xlu0 %v1562_v3, %s1358_s18  ;;  %v341_v7 = vsel %vm332_vm0, %v320_v49, %v322_v63  ;;  %vm1575_vm5 = vcmp.eq.s32.totalorder %v298_v58, 1  ;;  %v297_v9 = vand.u32 1, %v289_v59  ;;  %p1281_p5 = pnand %p1280_p2, %p1274_p0 }
  0x4b   : > { %v200_v10 = vshra.s32 %v168_v60, 13  ;;  %v1584_v13 = vsel %vm1519_vm3, %v341_v7, %v1539_v54  ;;  %v1586_v14 = vand.u32 4294959104, %v246_v5  ;;  %v324_v15 = vrot.slane %v1569_v6, 7 }
  0x4c   : > { %v232_v16 = vadd.s32 4095, %v168_v60  ;;  %vm1589_vm6 = vcmp.eq.s32.totalorder %v297_v9, 1  ;;  %v292_v21 = vadd.s32 56, %v1496_v1  ;;  %v291_v22 = vadd.s32 48, %v1496_v1 }
  0x4d   : > { %v216_v19 = vand.u32 1, %v200_v10  ;;  %436 = vrot.lane.b32.xlu1 %v1584_v13, %s1358_s18  ;;  %v326_v23 = vrot.slane %v1586_v14, 7  ;;  %v339_v24 = vsel %vm332_vm0, %v322_v63, %v324_v15  ;;  %v189_v25 = vshra.s32 %v157_v11, 13  ;;  %v165_v63 = vld [vmem:[%s1489_s4 + $0x48] sm:$0xff]  ;;  %v167_v10 = vld [vmem:[%s1489_s4 + $0x58] sm:$0xff] }
  0x4e   : > { %v191_v26 = vshra.s32 %v159_v12, 13  ;;  %432 = vrot.lane.b32.xlu0 %v1567_v4, %s1358_s18  ;;  %v1605_v27 = vsel %vm1589_vm6, %v339_v24, %v1569_v6  ;;  %v300_v29 = vand.u32 1, %v292_v21  ;;  %v299_v30 = vand.u32 1, %v291_v22 }
  0x4f   : > { %v248_v28 = vadd.s32 %v232_v16, %v216_v19  ;;  %v337_v32 = vsel %vm332_vm0, %v324_v15, %v326_v23  ;;  %v205_v33 = vand.u32 1, %v189_v25  ;;  %v221_v36 = vadd.s32 4095, %v157_v11 }
  0x50   : > { %v207_v35 = vand.u32 1, %v191_v26  ;;  %v1615_v39 = vsel %vm1575_vm5, %v337_v32, %v1586_v14  ;;  %vm1619_vm7 = vcmp.eq.s32.totalorder %v300_v29, 1  ;;  %vm1623_vm8 = vcmp.eq.s32.totalorder %v299_v30, 1 }
  0x51   : > { %v1617_v43 = vand.u32 4294959104, %v248_v28  ;;  %440 = vrot.lane.b32.xlu1 %v1615_v39, %s1358_s18  ;;  %v223_v48 = vadd.s32 4095, %v159_v12  ;;  %v237_v49 = vadd.s32 %v221_v36, %v205_v33  ;;  %v203_v50 = vshra.s32 %v171_v31, 13 }
  0x52   : > { %v235_v51 = vadd.s32 4095, %v171_v31  ;;  %438 = vrot.lane.b32.xlu0 %v1605_v27, %s1358_s18  ;;  %v193_v55 = vshra.s32 %v161_v37, 13  ;;  %v195_v56 = vshra.s32 %v163_v38, 13  ;;  %v225_v57 = vadd.s32 4095, %v161_v37 }
  0x53   : > { %v328_v52 = vrot.slane %v1617_v43, 7  ;;  %v239_v58 = vadd.s32 %v223_v48, %v207_v35  ;;  %v1632_v59 = vand.u32 4294959104, %v237_v49  ;;  %v219_v60 = vand.u32 1, %v203_v50 }
  0x54   : > { %v227_v62 = vadd.s32 4095, %v163_v38  ;;  %v209_v7 = vand.u32 1, %v193_v55  ;;  %v211_v9 = vand.u32 1, %v195_v56  ;;  %v197_v22 = vshra.s32 %v165_v63, 13 }
  0x55   : > { %v333_v2 = vsel %vm332_vm0, %v328_v52, %v330_v53  ;;  %v335_v5 = vsel %vm332_vm0, %v326_v23, %v328_v52  ;;  %v1652_v15 = vand.u32 4294959104, %v239_v58  ;;  %v317_v53 = vrot.slane %v1632_v59, 7  ;;  %v169_v23 = vld [vmem:[%s1489_s4 + $0x68] sm:$0xff] }
  0x56   : > { %v1645_v11 = vsel %vm1619_vm7, %v333_v2, %v1533_v45  ;;  %v1650_v12 = vsel %vm1623_vm8, %v335_v5, %v1617_v43  ;;  %v251_v16 = vadd.s32 %v235_v51, %v219_v60  ;;  %v241_v19 = vadd.s32 %v225_v57, %v209_v7 }
  0x57   : > { %444 = vrot.lane.b32.xlu1 %v1645_v11, %s1358_s18  ;;  %442 = vrot.lane.b32.xlu0 %v1650_v12, %s1358_s18  ;;  %v243_v21 = vadd.s32 %v227_v62, %v211_v9  ;;  %v319_v24 = vrot.slane %v1652_v15, 7  ;;  %v199_v25 = vshra.s32 %v167_v10, 13  ;;  %v229_v26 = vadd.s32 4095, %v165_v63 }
  0x58   : > { %v231_v28 = vadd.s32 4095, %v167_v10  ;;  %v1661_v29 = vand.u32 4294959104, %v251_v16  ;;  %v1663_v30 = vand.u32 4294959104, %v241_v19  ;;  %v213_v32 = vand.u32 1, %v197_v22 }
  0x59   : > { %v1665_v31 = vand.u32 4294959104, %v243_v21  ;;  %v346_v33 = vsel %vm332_vm0, %v317_v53, %v319_v24  ;;  %v215_v35 = vand.u32 1, %v199_v25  ;;  %v201_v36 = vshra.s32 %v169_v23, 13 }
  0x5a   : > { %v233_v37 = vadd.s32 4095, %v169_v23  ;;  %v1672_v38 = vsel %vm1527_vm4, %v346_v33, %v1652_v15  ;;  %v331_v48 = vrot.slane %v1661_v29, 7  ;;  %v321_v49 = vrot.slane %v1663_v30, 7 }
  0x5b   : > { %v323_v50 = vrot.slane %v1665_v31, 7  ;;  %448 = vrot.lane.b32.xlu1 %v1672_v38, %s1358_s18  ;;  %v245_v51 = vadd.s32 %v229_v26, %v213_v32  ;;  %v247_v52 = vadd.s32 %v231_v28, %v215_v35  ;;  %v217_v55 = vand.u32 1, %v201_v36 }
  0x5c   : > { %v383_v56 = vrot.slane %v1523_v40, 1  ;;  %v348_v57 = vsel %vm332_vm0, %v331_v48, %v317_v53  ;;  %v344_v60 = vsel %vm332_vm0, %v319_v24, %v321_v49  ;;  %v385_v62 = vrot.slane %v1525_v41, 1 }
  0x5d   : > { %v342_v58 = vsel %vm332_vm0, %v321_v49, %v323_v50  ;;  %v1690_v63 = vsel %vm1512_vm2, %v348_v57, %v1632_v59  ;;  %v1700_v5 = vsel %vm1508_vm1, %v344_v60, %v1663_v30  ;;  %v1702_v7 = vand.u32 4294959104, %v245_v51 }
  0x5e   : > { %v1695_v2 = vsel %vm1519_vm3, %v342_v58, %v1665_v31  ;;  %446 = vrot.lane.b32.xlu0 %v1690_v63, %s1358_s18  ;;  %v1706_v9 = vand.u32 4294959104, %v247_v52  ;;  %v249_v10 = vadd.s32 %v233_v37, %v217_v55  ;;  %vm397_vm9 = vcmp.lt.s32.totalorder %v1496_v1, 7 }
  0x5f   : > { %v381_v53 = vrot.slane %v1531_v44, 1  ;;  %452 = vrot.lane.b32.xlu1 %v1695_v2, %s1358_s18  ;;  %v325_v16 = vrot.slane %v1702_v7, 7  ;;  %v408_v19 = vsel %vm397_vm9, %v383_v56, %v385_v62  ;;  %v387_v21 = vrot.slane %v1539_v54, 1 }
  0x60   : > { %v389_v22 = vrot.slane %v1569_v6, 1  ;;  %v327_v23 = vrot.slane %v1706_v9, 7  ;;  %v265_v24 = vand.u32 4294959104, %v249_v10  ;;  %v1721_v25 = vsel %vm1527_vm4, %v1523_v40, %v408_v19 }
  0x61   : > { %v410_v26 = vsel %vm397_vm9, %v381_v53, %v383_v56  ;;  %v340_v28 = vsel %vm332_vm0, %v323_v50, %v325_v16  ;;  %v406_v35 = vsel %vm397_vm9, %v385_v62, %v387_v21  ;;  %v391_v51 = vrot.slane %v1586_v14, 1 }
  0x62   : > { %v1730_v32 = vsel %vm1512_vm2, %v1531_v44, %v410_v26  ;;  %v404_v33 = vsel %vm397_vm9, %v387_v21, %v389_v22  ;;  %450 = vrot.lane.b32.xlu0 %v1700_v5, %s1358_s18  ;;  %v338_v40 = vsel %vm332_vm0, %v325_v16, %v327_v23  ;;  %v1743_v36 = vsel %vm1589_vm6, %v340_v28, %v1702_v7 }
  0x63   : > { %v329_v37 = vrot.slane %v265_v24, 7  ;;  %v1748_v44 = vsel %vm1519_vm3, %v1539_v54, %v404_v33  ;;  %v1753_v49 = vsel %vm1575_vm5, %v338_v40, %v1706_v9  ;;  %v1758_v50 = vsel %vm1508_vm1, %v1525_v41, %v406_v35 }
  0x64   : > { %v393_v52 = vrot.slane %v1617_v43, 1  ;;  %456 = vrot.lane.b32.xlu1 %v1753_v49, %s1358_s18  ;;  %v395_v56 = vrot.slane %v1533_v45, 1  ;;  %v384_v57 = vrot.slane %v1652_v15, 1  ;;  %v392_v26 = vrot.slane %v1706_v9, 1 }
  0x65   : > { %v334_v54 = vsel %vm332_vm0, %v329_v37, %v331_v48  ;;  %v336_v55 = vsel %vm332_vm0, %v327_v23, %v329_v37  ;;  %v402_v48 = vsel %vm397_vm9, %v389_v22, %v391_v51  ;;  %v386_v22 = vrot.slane %v1663_v30, 1 }
  0x66   : > { %v1773_v41 = vsel %vm1619_vm7, %v334_v54, %v1661_v29  ;;  %v1777_v58 = vsel %vm1623_vm8, %v336_v55, %v265_v24  ;;  %v400_v60 = vsel %vm397_vm9, %v391_v51, %v393_v52  ;;  %454 = vrot.lane.b32.xlu0 %v1743_v36, %s1358_s18  ;;  %v1793_v10 = vsel %vm1589_vm6, %v1569_v6, %v402_v48 }
  0x67   : > { %v1788_v62 = vsel %vm1575_vm5, %v1586_v14, %v400_v60  ;;  %v412_v16 = vsel %vm397_vm9, %v395_v56, %v381_v53  ;;  %v398_v19 = vsel %vm397_vm9, %v393_v52, %v395_v56  ;;  %v382_v6 = vrot.slane %v1632_v59, 1 }
  0x68   : > { %v1802_v21 = vsel %vm1619_vm7, %v1533_v45, %v412_v16  ;;  %v1807_v14 = vsel %vm1623_vm8, %v1617_v43, %v398_v19  ;;  %460 = vrot.lane.b32.xlu1 %v1773_v41, %s1358_s18  ;;  %v388_v53 = vrot.slane %v1665_v31, 1  ;;  %v390_v23 = vrot.slane %v1702_v7, 1 }
  0x69   : > { %v394_v45 = vrot.slane %v265_v24, 1  ;;  %v409_v28 = vsel %vm397_vm9, %v384_v57, %v386_v22  ;;  %v411_v43 = vsel %vm397_vm9, %v382_v6, %v384_v57  ;;  %v396_v33 = vrot.slane %v1661_v29, 1 }
  0x6a   : > { %458 = vrot.lane.b32.xlu0 %v1777_v58, %s1358_s18  ;;  %v1826_v35 = vsel %vm1527_vm4, %v1652_v15, %v409_v28  ;;  %v1831_v40 = vsel %vm1512_vm2, %v1632_v59, %v411_v43  ;;  %v405_v37 = vsel %vm397_vm9, %v388_v53, %v390_v23  ;;  %v407_v51 = vsel %vm397_vm9, %v386_v22, %v388_v53 }
  0x6b   : > { %v1840_v52 = vsel %vm1519_vm3, %v1665_v31, %v405_v37  ;;  %v1845_v42 = vsel %vm1508_vm1, %v1663_v30, %v407_v51  ;;  %v401_v20 = vsel %vm397_vm9, %v392_v26, %v394_v45  ;;  %v403_v59 = vsel %vm397_vm9, %v390_v23, %v392_v26 }
  0x6c   : > { %533 = vrot.lane.b32.xlu1 %v1567_v4, %s1359_s27  ;;  %v1856_v34 = vsel %vm1575_vm5, %v1706_v9, %v401_v20  ;;  %v1861_v17 = vsel %vm1589_vm6, %v1702_v7, %v403_v59  ;;  %v413_v15 = vsel %vm397_vm9, %v396_v33, %v382_v6  ;;  %v399_v30 = vsel %vm397_vm9, %v394_v45, %v396_v33 }
  0x6d   : > { %v1870_v31 = vsel %vm1619_vm7, %v1661_v29, %v413_v15  ;;  %v1874_v8 = vsel %vm1623_vm8, %v265_v24, %v399_v30  ;;  %v1959_v47 = vand.u32 127, %v284_v0 }
  0x6e   : > { %531 = vrot.lane.b32.xlu0 %v1562_v3, %s1359_s27 }
  0x6f   : > { %v311_v9 = vadd.s32 128, %v1959_v47  ;;  %v312_v0 = vand.u32 1, %v1959_v47  ;;  %vm462_vm10 = vcmp.lt.s32.totalorder %v1959_v47, 1  ;;  %vm563_vm13 = vcmp.lt.s32.totalorder %v1959_v47, 127 }
  0x70   : > { %537 = vrot.lane.b32.xlu1 %v1584_v13, %s1359_s27 }
  0x71   : > { %v313_v54 = vand.u32 1, %v311_v9  ;;  %vm1980_vm11 = vcmp.eq.s32.totalorder %v312_v0, 1 }
  0x72   : > { %535 = vrot.lane.b32.xlu0 %v1548_v61, %s1359_s27 }
  0x73   : > { %vm1984_vm12 = vcmp.eq.s32.totalorder %v313_v54, 1 }
  0x74   : > { %541 = vrot.lane.b32.xlu1 %v1615_v39, %s1359_s27 }
  0x76   : > { %539 = vrot.lane.b32.xlu0 %v1605_v27, %s1359_s27 }
  0x78   : > { %545 = vrot.lane.b32.xlu1 %v1645_v11, %s1359_s27 }
  0x7a   : > { %543 = vrot.lane.b32.xlu0 %v1650_v12, %s1359_s27 }
  0x7c   : > { %549 = vrot.lane.b32.xlu1 %v1672_v38, %s1359_s27 }
  0x7e   : > { %547 = vrot.lane.b32.xlu0 %v1690_v63, %s1359_s27 }
  0x80   : > { %553 = vrot.lane.b32.xlu1 %v1695_v2, %s1359_s27 }
  0x82   : > { %551 = vrot.lane.b32.xlu0 %v1700_v5, %s1359_s27 }
  0x84   : > { %557 = vrot.lane.b32.xlu1 %v1753_v49, %s1359_s27 }
  0x86   : > { %555 = vrot.lane.b32.xlu0 %v1743_v36, %s1359_s27 }
  0x88   : > { %561 = vrot.lane.b32.xlu1 %v1773_v41, %s1359_s27 }
  0x8a   : > { %559 = vrot.lane.b32.xlu0 %v1777_v58, %s1359_s27 }
  0x8c   : > { %614 = vrot.lane.b32.xlu1 %v1721_v25, %s1358_s18 }
  0x8e   : > { %612 = vrot.lane.b32.xlu0 %v1730_v32, %s1358_s18 }
  0x90   : > { %618 = vrot.lane.b32.xlu1 %v1748_v44, %s1358_s18 }
  0x92   : > { %616 = vrot.lane.b32.xlu0 %v1758_v50, %s1358_s18 }
  0x94   : > { %622 = vrot.lane.b32.xlu1 %v1788_v62, %s1358_s18 }
  0x96   : > { %620 = vrot.lane.b32.xlu0 %v1793_v10, %s1358_s18 }
  0x98   : > { %626 = vrot.lane.b32.xlu1 %v1802_v21, %s1358_s18 }
  0x9a   : > { %624 = vrot.lane.b32.xlu0 %v1807_v14, %s1358_s18 }
  0x9c   : > { %630 = vrot.lane.b32.xlu1 %v1826_v35, %s1358_s18 }
  0x9e   : > { %628 = vrot.lane.b32.xlu0 %v1831_v40, %s1358_s18 }
  0xa0   : > { %634 = vrot.lane.b32.xlu1 %v1840_v52, %s1358_s18 }
  0xa2   : > { %632 = vrot.lane.b32.xlu0 %v1845_v42, %s1358_s18 }
  0xa4   : > { %638 = vrot.lane.b32.xlu1 %v1856_v34, %s1358_s18 }
  0xa6   : > { %636 = vrot.lane.b32.xlu0 %v1861_v17, %s1358_s18 }
  0xa8   : > { %642 = vrot.lane.b32.xlu1 %v1870_v31, %s1358_s18 }
  0xaa   : > { %640 = vrot.lane.b32.xlu0 %v1874_v8, %s1358_s18 }
  0xac   : > { %855 = vrot.lane.b32.xlu1 %v1721_v25, %s1359_s27 }
  0xae   : > { %853 = vrot.lane.b32.xlu0 %v1730_v32, %s1359_s27 }
  0xb0   : > { %859 = vrot.lane.b32.xlu1 %v1748_v44, %s1359_s27 }
  0xb2   : > { %857 = vrot.lane.b32.xlu0 %v1758_v50, %s1359_s27 }
  0xb4   : > { %863 = vrot.lane.b32.xlu1 %v1788_v62, %s1359_s27 }
  0xb6   : > { %861 = vrot.lane.b32.xlu0 %v1793_v10, %s1359_s27 }
  0xb8   : > { %867 = vrot.lane.b32.xlu1 %v1802_v21, %s1359_s27 }
  0xba   : > { %865 = vrot.lane.b32.xlu0 %v1807_v14, %s1359_s27 }
  0xbb   : > { %v435_v1 = vpop.permute.xlu1 %434 }
  0xbc   : > { %871 = vrot.lane.b32.xlu1 %v1826_v35, %s1359_s27  ;;  %v431_v18 = vpop.permute.xlu0 %430 }
  0xbe   : > { %869 = vrot.lane.b32.xlu0 %v1831_v40, %s1359_s27 }
  0xbf   : > { %v437_v46 = vpop.permute.xlu1 %436 }
  0xc0   : > { %875 = vrot.lane.b32.xlu1 %v1840_v52, %s1359_s27  ;;  %v433_v29 = vpop.permute.xlu0 %432 }
  0xc2   : > { %873 = vrot.lane.b32.xlu0 %v1845_v42, %s1359_s27 }
  0xc3   : > { %v441_v7 = vpop.permute.xlu1 %440 }
  0xc4   : > { %879 = vrot.lane.b32.xlu1 %v1856_v34, %s1359_s27  ;;  %v439_v24 = vpop.permute.xlu0 %438 }
  0xc6   : > { %877 = vrot.lane.b32.xlu0 %v1861_v17, %s1359_s27 }
  0xc8   : > { %883 = vrot.lane.b32.xlu1 %v1870_v31, %s1359_s27 }
  0xc9   : > { %v1973_v55 = vpop.permute.xlu1 %444  ;;  %v1977_v56 = vpop.permute.xlu0 %442 }
  0xca   : > { %881 = vrot.lane.b32.xlu0 %v1874_v8, %s1359_s27 }
  0xcd   : > { %v449_v48 = vpop.permute.xlu1 %448 }
  0xce   : > { %v464_v16 = vsel %vm462_vm10, %v433_v29, %v449_v48  ;;  %v472_v19 = vsel %vm462_vm10, %v449_v48, %v433_v29 }
  0xcf   : > { %v485_v22 = vsel %vm1980_vm11, %v472_v19, %v1567_v4  ;;  %v486_v6 = vsel %vm1984_vm12, %v464_v16, %v1672_v38 }
  0xd0   : > { %v447_v53 = vpop.permute.xlu0 %446  ;;  %v1080_v23 = vtrunc.f32 %v485_v22  ;;  %v1082_v26 = vtrunc.f32 %v486_v6 }
  0xd1   : > { %v463_v45 = vsel %vm462_vm10, %v431_v18, %v447_v53  ;;  %v471_v28 = vsel %vm462_vm10, %v447_v53, %v431_v18  ;;  %v453_v43 = vpop.permute.xlu1 %452 }
  0xd2   : > { %v483_v33 = vsel %vm1980_vm11, %v471_v28, %v1562_v3  ;;  %v484_v37 = vsel %vm1984_vm12, %v463_v45, %v1690_v63  ;;  %v466_v59 = vsel %vm462_vm10, %v437_v46, %v453_v43  ;;  %v474_v15 = vsel %vm462_vm10, %v453_v43, %v437_v46 }
  0xd3   : > { %v1076_v51 = vtrunc.f32 %v483_v33  ;;  %v1078_v20 = vtrunc.f32 %v484_v37  ;;  %v489_v30 = vsel %vm1980_vm11, %v474_v15, %v1584_v13  ;;  %v490_v18 = vsel %vm1984_vm12, %v466_v59, %v1695_v2 }
  0xd4   : > { %v451_v29 = vpop.permute.xlu0 %450  ;;  %v1081_v9 = vcvt.f32.s32 %v1080_v23  ;;  %v1083_v0 = vcvt.f32.s32 %v1082_v26  ;;  %v1088_v54 = vtrunc.f32 %v489_v30  ;;  %v1090_v48 = vtrunc.f32 %v490_v18 }
  0xd5   : > { %v1077_v16 = vcvt.f32.s32 %v1076_v51  ;;  %v1079_v19 = vcvt.f32.s32 %v1078_v20  ;;  %v465_v22 = vsel %vm462_vm10, %v435_v1, %v451_v29  ;;  %v473_v46 = vsel %vm462_vm10, %v451_v29, %v435_v1 }
  0xd6   : > { %v457_v6 = vpop.permute.xlu1 %456  ;;  %v1089_v53 = vcvt.f32.s32 %v1088_v54  ;;  %v1091_v45 = vcvt.f32.s32 %v1090_v48  ;;  %v487_v28 = vsel %vm1980_vm11, %v473_v46, %v1548_v61  ;;  %v488_v23 = vsel %vm1984_vm12, %v465_v22, %v1700_v5 }
  0xd7   : > { %v468_v26 = vsel %vm462_vm10, %v441_v7, %v457_v6  ;;  %v476_v43 = vsel %vm462_vm10, %v457_v6, %v441_v7  ;;  %v1084_v37 = vtrunc.f32 %v487_v28  ;;  %v1086_v1 = vtrunc.f32 %v488_v23 }
  0xd8   : > { %v455_v33 = vpop.permute.xlu0 %454  ;;  %v493_v51 = vsel %vm1980_vm11, %v476_v43, %v1615_v39  ;;  %v494_v20 = vsel %vm1984_vm12, %v468_v26, %v1753_v49  ;;  %v515_v59 = vpack.c.b16 %v1081_v9, %v1077_v16  ;;  %v518_v15 = vpack.c.b16 %v1083_v0, %v1079_v19 }
  0xd9   : > { %v467_v30 = vsel %vm462_vm10, %v439_v24, %v455_v33  ;;  %v475_v7 = vsel %vm462_vm10, %v455_v33, %v439_v24  ;;  %v1085_v29 = vcvt.f32.s32 %v1084_v37  ;;  %v1087_v54 = vcvt.f32.s32 %v1086_v1 }
  0xda   : > { %v461_v18 = vpop.permute.xlu1 %460  ;;  %v491_v48 = vsel %vm1980_vm11, %v475_v7, %v1605_v27  ;;  %v492_v22 = vsel %vm1984_vm12, %v467_v30, %v1743_v36  ;;  %v1096_v9 = vtrunc.f32 %v493_v51  ;;  %v1098_v0 = vtrunc.f32 %v494_v20 }
  0xdb   : > { %v1092_v16 = vtrunc.f32 %v491_v48  ;;  %v1094_v19 = vtrunc.f32 %v492_v22  ;;  %v516_v6 = vpack.c.b16 %v1089_v53, %v1085_v29  ;;  %v519_v28 = vpack.c.b16 %v1091_v45, %v1087_v54 }
  0xdc   : > { %v459_v46 = vpop.permute.xlu0 %458  ;;  %v470_v24 = vsel %vm462_vm10, %v1973_v55, %v461_v18  ;;  %v478_v23 = vsel %vm462_vm10, %v461_v18, %v1973_v55  ;;  %v1097_v51 = vcvt.f32.s32 %v1096_v9  ;;  %v1099_v20 = vcvt.f32.s32 %v1098_v0 }
  0xdd   : > { %v497_v26 = vsel %vm1980_vm11, %v478_v23, %v1645_v11  ;;  %v498_v43 = vsel %vm1984_vm12, %v470_v24, %v1773_v41  ;;  %v517_v37 = vpack.c.b8 %v516_v6, %v515_v59  ;;  %v520_v53 = vpack.c.b8 %v519_v28, %v518_v15 }
  0xde   : > { %v534_v33 = vpop.permute.xlu1 %533  ;;  %v1104_v45 = vtrunc.f32 %v497_v26  ;;  %v1106_v1 = vtrunc.f32 %v498_v43  ;;  %v469_v30 = vsel %vm462_vm10, %v1977_v56, %v459_v46  ;;  %v477_v55 = vsel %vm462_vm10, %v459_v46, %v1977_v56 }
  0xdf   : > { %527 = vst [vmem:[%s2067_s30] sm:$0xff] %v517_v37  ;;  %528 = vst [vmem:[%s2067_s30 + $0x8] sm:$0xff] %v520_v53  ;;  %v1093_v59 = vcvt.f32.s32 %v1092_v16  ;;  %v1095_v15 = vcvt.f32.s32 %v1094_v19  ;;  %v495_v18 = vsel %vm1980_vm11, %v477_v55, %v1650_v12  ;;  %v496_v29 = vsel %vm1984_vm12, %v469_v30, %v1777_v58 }
  0xe0   : > { %v532_v7 = vpop.permute.xlu0 %531  ;;  %v1105_v54 = vcvt.f32.s32 %v1104_v45  ;;  %v1107_v56 = vcvt.f32.s32 %v1106_v1  ;;  %v1100_v48 = vtrunc.f32 %v495_v18  ;;  %v1102_v22 = vtrunc.f32 %v496_v29 }
  0xe1   : > { %v521_v16 = vpack.c.b16 %v1097_v51, %v1093_v59  ;;  %v524_v19 = vpack.c.b16 %v1099_v20, %v1095_v15 }
  0xe2   : > { %v538_v9 = vpop.permute.xlu1 %537  ;;  %v1101_v0 = vcvt.f32.s32 %v1100_v48  ;;  %v1103_v46 = vcvt.f32.s32 %v1102_v22 }
  0xe4   : > { %v536_v6 = vpop.permute.xlu0 %535  ;;  %v522_v28 = vpack.c.b16 %v1105_v54, %v1101_v0  ;;  %v525_v24 = vpack.c.b16 %v1107_v56, %v1103_v46 }
  0xe6   : > { %v542_v23 = vpop.permute.xlu1 %541  ;;  %v523_v26 = vpack.c.b8 %v522_v28, %v521_v16  ;;  %v526_v43 = vpack.c.b8 %v525_v24, %v524_v19 }
  0xe8   : > { %v540_v37 = vpop.permute.xlu0 %539  ;;  %529 = vst [vmem:[%s2067_s30 + $0x10] sm:$0xff] %v523_v26  ;;  %530 = vst [vmem:[%s2067_s30 + $0x18] sm:$0xff] %v526_v43 }
  0xea   : > { %v546_v53 = vpop.permute.xlu1 %545 }
  0xec   : > { %v544_v45 = vpop.permute.xlu0 %543 }
  0xee   : > { %v550_v1 = vpop.permute.xlu1 %549 }
  0xef   : > { %v565_v26 = vsel %vm563_vm13, %v534_v33, %v550_v1  ;;  %v573_v43 = vsel %vm563_vm13, %v550_v1, %v534_v33 }
  0xf0   : > { %v548_v30 = vpop.permute.xlu0 %547 }
  0xf2   : > { %v554_v55 = vpop.permute.xlu1 %553 }
  0xf4   : > { %v552_v18 = vpop.permute.xlu0 %551 }
  0xf5   : > { %v574_v33 = vsel %vm563_vm13, %v552_v18, %v536_v6 }
  0xf6   : > { %v558_v29 = vpop.permute.xlu1 %557 }
  0xf7   : > { %v569_v51 = vsel %vm563_vm13, %v542_v23, %v558_v29  ;;  %v577_v20 = vsel %vm563_vm13, %v558_v29, %v542_v23  ;;  %v567_v29 = vsel %vm563_vm13, %v538_v9, %v554_v55 }
  0xf8   : > { %v556_v59 = vpop.permute.xlu0 %555 }
  0xf9   : > { %v568_v15 = vsel %vm563_vm13, %v540_v37, %v556_v59  ;;  %v576_v54 = vsel %vm563_vm13, %v556_v59, %v540_v37  ;;  %v564_v37 = vsel %vm563_vm13, %v532_v7, %v548_v30  ;;  %v575_v59 = vsel %vm563_vm13, %v554_v55, %v538_v9 }
  0xfa   : > { %v562_v56 = vpop.permute.xlu1 %561  ;;  %v580_v9 = vsel %vm1980_vm11, %v1562_v3, %v564_v37  ;;  %v585_v3 = vsel %vm1984_vm12, %v1700_v5, %v574_v33 }
  0xfb   : > { %v571_v48 = vsel %vm563_vm13, %v546_v53, %v562_v56  ;;  %v579_v22 = vsel %vm563_vm13, %v562_v56, %v546_v53  ;;  %v572_v53 = vsel %vm563_vm13, %v548_v30, %v532_v7  ;;  %v566_v56 = vsel %vm563_vm13, %v536_v6, %v552_v18 }
  0xfc   : > { %v560_v0 = vpop.permute.xlu0 %559  ;;  %v582_v7 = vsel %vm1980_vm11, %v1567_v4, %v565_v26  ;;  %v583_v30 = vsel %vm1984_vm12, %v1672_v38, %v573_v43  ;;  %v581_v55 = vsel %vm1984_vm12, %v1690_v63, %v572_v53  ;;  %v586_v6 = vsel %vm1980_vm11, %v1584_v13, %v567_v29 }
  0xfd   : > { %v2094_v46 = vsel %vm563_vm13, %v544_v45, %v560_v0  ;;  %v2098_v16 = vsel %vm563_vm13, %v560_v0, %v544_v45  ;;  %v587_v4 = vsel %vm1984_vm12, %v1695_v2, %v575_v59  ;;  %v584_v38 = vsel %vm1980_vm11, %v1548_v61, %v566_v56 }
  0xfe   : > { %v615_v19 = vpop.permute.xlu1 %614  ;;  %v590_v63 = vsel %vm1980_vm11, %v1615_v39, %v569_v51  ;;  %v591_v13 = vsel %vm1984_vm12, %v1753_v49, %v577_v20  ;;  %v588_v2 = vsel %vm1980_vm11, %v1605_v27, %v568_v15  ;;  %v589_v61 = vsel %vm1984_vm12, %v1743_v36, %v576_v54 }
  0xff   : > { %v598_v0 = vmul.f32 0.5, %v582_v7  ;;  %v599_v5 = vmul.f32 0.5, %v583_v30  ;;  %v596_v26 = vmul.f32 0.5, %v580_v9  ;;  %v597_v43 = vmul.f32 0.5, %v581_v55 }
 0x100   : > { %v613_v28 = vpop.permute.xlu0 %612  ;;  %v602_v53 = vmul.f32 0.5, %v586_v6  ;;  %v603_v39 = vmul.f32 0.5, %v587_v4  ;;  %v2164_v51 = vmul.f32 0.5, %v584_v38  ;;  %v2166_v29 = vmul.f32 0.5, %v585_v3 }
 0x101   : > { %v2168_v49 = vmul.f32 0.5, %v590_v63  ;;  %v2170_v20 = vmul.f32 0.5, %v591_v13  ;;  %v2172_v27 = vmul.f32 0.5, %v588_v2  ;;  %v2174_v15 = vmul.f32 0.5, %v589_v61 }
 0x102   : > { %v2100_v24 = vpop.permute.xlu1 %618  ;;  %v594_v54 = vsel %vm1980_vm11, %v1645_v11, %v571_v48  ;;  %v595_v59 = vsel %vm1984_vm12, %v1773_v41, %v579_v22  ;;  %v592_v7 = vsel %vm1980_vm11, %v1650_v12, %v2094_v46  ;;  %v593_v11 = vsel %vm1984_vm12, %v1777_v58, %v2098_v16 }
 0x103   : > { %v2204_v46 = vmul.f32 0.5, %v594_v54  ;;  %v2206_v58 = vmul.f32 0.5, %v595_v59  ;;  %v2214_v13 = vmul.f32 0.5, %v592_v7 }
 0x104   : > { %v2102_v23 = vpop.permute.xlu0 %616 }
 0x106   : > { %v2112_v45 = vpop.permute.xlu1 %622 }
 0x108   : > { %v2122_v1 = vpop.permute.xlu0 %620 }
 0x10a   : > { %v2148_v18 = vpop.permute.xlu1 %626 }
 0x10c   : > { %v2162_v37 = vpop.permute.xlu0 %624 }
 0x10e   : > { %v631_v36 = vpop.permute.xlu1 %630 }
 0x10f   : > { %v645_v56 = vsel %vm462_vm10, %v615_v19, %v631_v36  ;;  %v653_v33 = vsel %vm462_vm10, %v631_v36, %v615_v19 }
 0x110   : > { %v662_v41 = vsel %vm1980_vm11, %v653_v33, %v1721_v25  ;;  %v663_v48 = vsel %vm1984_vm12, %v645_v56, %v1826_v35  ;;  %v629_v22 = vpop.permute.xlu0 %628 }
 0x111   : > { %v678_v19 = vmul.f32 0.5, %v662_v41  ;;  %v679_v30 = vmul.f32 0.5, %v663_v48  ;;  %v644_v9 = vsel %vm462_vm10, %v613_v28, %v629_v22  ;;  %v652_v12 = vsel %vm462_vm10, %v629_v22, %v613_v28 }
 0x112   : > { %v660_v16 = vsel %vm1980_vm11, %v652_v12, %v1730_v32  ;;  %v661_v55 = vsel %vm1984_vm12, %v644_v9, %v1831_v40  ;;  %v635_v6 = vpop.permute.xlu1 %634  ;;  %v2216_v28 = vmul.f32 0.5, %v593_v11 }
 0x113   : > { %v694_v4 = vadd.f32 %v678_v19, %v598_v0  ;;  %v695_v38 = vadd.f32 %v679_v30, %v599_v5  ;;  %v676_v3 = vmul.f32 0.5, %v660_v16  ;;  %v677_v63 = vmul.f32 0.5, %v661_v55 }
 0x114   : > { %v647_v2 = vsel %vm462_vm10, %v2100_v24, %v635_v6  ;;  %v655_v61 = vsel %vm462_vm10, %v635_v6, %v2100_v24  ;;  %v633_v36 = vpop.permute.xlu0 %632 }
 0x115   : > { %v726_v54 = vshra.s32 %v694_v4, 13  ;;  %v727_v59 = vshra.s32 %v695_v38, 13  ;;  %v758_v56 = vadd.s32 4095, %v694_v4  ;;  %v759_v0 = vadd.s32 4095, %v695_v38 }
 0x116   : > { %v692_v5 = vadd.f32 %v676_v3, %v596_v26  ;;  %v693_v33 = vadd.f32 %v677_v63, %v597_v43  ;;  %v666_v7 = vsel %vm1980_vm11, %v655_v61, %v1748_v44  ;;  %v667_v11 = vsel %vm1984_vm12, %v647_v2, %v1840_v52  ;;  %v639_v41 = vpop.permute.xlu1 %638 }
 0x117   : > { %v742_v48 = vand.u32 1, %v726_v54  ;;  %v743_v22 = vand.u32 1, %v727_v59  ;;  %v682_v19 = vmul.f32 0.5, %v666_v7  ;;  %v683_v24 = vmul.f32 0.5, %v667_v11 }
 0x118   : > { %v724_v30 = vshra.s32 %v692_v5, 13  ;;  %v725_v9 = vshra.s32 %v693_v33, 13  ;;  %v756_v12 = vadd.s32 4095, %v692_v5  ;;  %v757_v16 = vadd.s32 4095, %v693_v33  ;;  %v2230_v55 = vpop.permute.xlu0 %636 }
 0x119   : > { %v774_v26 = vadd.s32 %v758_v56, %v742_v48  ;;  %v775_v43 = vadd.s32 %v759_v0, %v743_v22  ;;  %v698_v6 = vadd.f32 %v682_v19, %v602_v53  ;;  %v699_v4 = vadd.f32 %v683_v24, %v603_v39 }
 0x11a   : > { %v740_v38 = vand.u32 1, %v724_v30  ;;  %v741_v3 = vand.u32 1, %v725_v9  ;;  %v646_v63 = vsel %vm462_vm10, %v2102_v23, %v633_v36  ;;  %v654_v2 = vsel %vm462_vm10, %v633_v36, %v2102_v23  ;;  %v643_v61 = vpop.permute.xlu1 %642 }
 0x11b   : > { %v790_v54 = vand.u32 4294959104, %v774_v26  ;;  %v791_v59 = vand.u32 4294959104, %v775_v43  ;;  %v730_v5 = vshra.s32 %v698_v6, 13  ;;  %v731_v33 = vshra.s32 %v699_v4, 13 }
 0x11c   : > { %v772_v7 = vadd.s32 %v756_v12, %v740_v38  ;;  %v773_v56 = vadd.s32 %v757_v16, %v741_v3  ;;  %v762_v0 = vadd.s32 4095, %v698_v6  ;;  %v763_v53 = vadd.s32 4095, %v699_v4  ;;  %v2238_v39 = vpop.permute.xlu0 %640 }
 0x11d   : > { %v1112_v11 = vtrunc.f32 %v790_v54  ;;  %v1114_v48 = vtrunc.f32 %v791_v59  ;;  %v746_v22 = vand.u32 1, %v730_v5  ;;  %v747_v19 = vand.u32 1, %v731_v33 }
 0x11e   : > { %v788_v24 = vand.u32 4294959104, %v772_v7  ;;  %v789_v30 = vand.u32 4294959104, %v773_v56  ;;  %v664_v23 = vsel %vm1980_vm11, %v654_v2, %v1758_v50  ;;  %v665_v36 = vsel %vm1984_vm12, %v646_v63, %v1845_v42  ;;  %v2246_v9 = vpop.permute.xlu1 %855 }
 0x11f   : > { %v1113_v12 = vcvt.f32.s32 %v1112_v11  ;;  %v1115_v16 = vcvt.f32.s32 %v1114_v48  ;;  %v778_v26 = vadd.s32 %v762_v0, %v746_v22  ;;  %v779_v43 = vadd.s32 %v763_v53, %v747_v19 }
 0x120   : > { %v1108_v6 = vtrunc.f32 %v788_v24  ;;  %v1110_v4 = vtrunc.f32 %v789_v30  ;;  %v680_v38 = vmul.f32 0.5, %v664_v23  ;;  %v681_v3 = vmul.f32 0.5, %v665_v36  ;;  %v2248_v54 = vpop.permute.xlu0 %853 }
 0x121   : > { %v794_v59 = vand.u32 4294959104, %v778_v26  ;;  %v795_v5 = vand.u32 4294959104, %v779_v43  ;;  %v649_v2 = vsel %vm462_vm10, %v2112_v45, %v639_v41  ;;  %v657_v63 = vsel %vm462_vm10, %v639_v41, %v2112_v45 }
 0x122   : > { %v1109_v33 = vcvt.f32.s32 %v1108_v6  ;;  %v1111_v7 = vcvt.f32.s32 %v1110_v4  ;;  %v696_v56 = vadd.f32 %v680_v38, %v2164_v51  ;;  %v697_v0 = vadd.f32 %v681_v3, %v2166_v29  ;;  %v2258_v53 = vpop.permute.xlu1 %859 }
 0x123   : > { %v1120_v11 = vtrunc.f32 %v794_v59  ;;  %v1122_v48 = vtrunc.f32 %v795_v5  ;;  %v670_v22 = vsel %vm1980_vm11, %v657_v63, %v1788_v62  ;;  %v671_v19 = vsel %vm1984_vm12, %v649_v2, %v1856_v34 }
 0x124   : > { %v2266_v24 = vpack.c.b16 %v1113_v12, %v1109_v33  ;;  %v2268_v45 = vpack.c.b16 %v1115_v16, %v1111_v7  ;;  %v728_v41 = vshra.s32 %v696_v56, 13  ;;  %v729_v51 = vshra.s32 %v697_v0, 13  ;;  %v2270_v38 = vpop.permute.xlu0 %857 }
 0x125   : > { %v1121_v30 = vcvt.f32.s32 %v1120_v11  ;;  %v1123_v29 = vcvt.f32.s32 %v1122_v48  ;;  %v760_v23 = vadd.s32 4095, %v696_v56  ;;  %v761_v36 = vadd.s32 4095, %v697_v0 }
 0x126   : > { %v744_v26 = vand.u32 1, %v728_v41  ;;  %v745_v43 = vand.u32 1, %v729_v51  ;;  %v686_v6 = vmul.f32 0.5, %v670_v22  ;;  %v687_v4 = vmul.f32 0.5, %v671_v19  ;;  %v2286_v5 = vpop.permute.xlu1 %863 }
 0x127   : > { %v648_v12 = vsel %vm462_vm10, %v2122_v1, %v2230_v55  ;;  %v656_v16 = vsel %vm462_vm10, %v2230_v55, %v2122_v1  ;;  %v651_v3 = vsel %vm462_vm10, %v2148_v18, %v643_v61  ;;  %v659_v59 = vsel %vm462_vm10, %v643_v61, %v2148_v18 }
 0x128   : > { %v776_v2 = vadd.s32 %v760_v23, %v744_v26  ;;  %v777_v63 = vadd.s32 %v761_v36, %v745_v43  ;;  %v702_v33 = vadd.f32 %v686_v6, %v2168_v49  ;;  %v703_v7 = vadd.f32 %v687_v4, %v2170_v20  ;;  %v2302_v26 = vpop.permute.xlu0 %861 }
 0x129   : > { %v668_v1 = vsel %vm1980_vm11, %v656_v16, %v1793_v10  ;;  %v669_v55 = vsel %vm1984_vm12, %v648_v12, %v1861_v17  ;;  %v674_v18 = vsel %vm1980_vm11, %v659_v59, %v1802_v21  ;;  %v675_v61 = vsel %vm1984_vm12, %v651_v3, %v1870_v31 }
 0x12a   : > { %v792_v56 = vand.u32 4294959104, %v776_v2  ;;  %v793_v49 = vand.u32 4294959104, %v777_v63  ;;  %v734_v0 = vshra.s32 %v702_v33, 13  ;;  %v735_v20 = vshra.s32 %v703_v7, 13  ;;  %v2306_v16 = vpop.permute.xlu1 %867 }
 0x12b   : > { %v766_v11 = vadd.s32 4095, %v702_v33  ;;  %v767_v48 = vadd.s32 4095, %v703_v7  ;;  %v684_v22 = vmul.f32 0.5, %v668_v1  ;;  %v685_v19 = vmul.f32 0.5, %v669_v55 }
 0x12c   : > { %v1116_v41 = vtrunc.f32 %v792_v56  ;;  %v1118_v51 = vtrunc.f32 %v793_v49  ;;  %v750_v23 = vand.u32 1, %v734_v0  ;;  %v751_v36 = vand.u32 1, %v735_v20 }
 0x12d   : > { %v700_v43 = vadd.f32 %v684_v22, %v2172_v27  ;;  %v701_v6 = vadd.f32 %v685_v19, %v2174_v15  ;;  %v690_v4 = vmul.f32 0.5, %v674_v18  ;;  %v691_v12 = vmul.f32 0.5, %v675_v61 }
 0x12e   : > { %v1117_v3 = vcvt.f32.s32 %v1116_v41  ;;  %v1119_v59 = vcvt.f32.s32 %v1118_v51  ;;  %v782_v2 = vadd.s32 %v766_v11, %v750_v23  ;;  %v783_v63 = vadd.s32 %v767_v48, %v751_v36  ;;  %v2312_v41 = vpop.permute.xlu0 %865  ;;  %v872_v36 = vpop.permute.xlu1 %871 }
 0x12f   : > { %v732_v33 = vshra.s32 %v700_v43, 13  ;;  %v733_v7 = vshra.s32 %v701_v6, 13  ;;  %v764_v1 = vadd.s32 4095, %v700_v43  ;;  %v765_v55 = vadd.s32 4095, %v701_v6 }
 0x130   : > { %v837_v56 = vpack.c.b16 %v1121_v30, %v1117_v3  ;;  %v840_v49 = vpack.c.b16 %v1123_v29, %v1119_v59  ;;  %v798_v0 = vand.u32 4294959104, %v782_v2  ;;  %v799_v20 = vand.u32 4294959104, %v783_v63 }
 0x131   : > { %v748_v27 = vand.u32 1, %v732_v33  ;;  %v749_v15 = vand.u32 1, %v733_v7  ;;  %v706_v18 = vadd.f32 %v690_v4, %v2204_v46  ;;  %v707_v61 = vadd.f32 %v691_v12, %v2206_v58 }
 0x132   : > { %v838_v22 = vpack.c.b8 %v837_v56, %v2266_v24  ;;  %v841_v11 = vpack.c.b8 %v840_v49, %v2268_v45  ;;  %v1128_v48 = vtrunc.f32 %v798_v0  ;;  %v1130_v19 = vtrunc.f32 %v799_v20  ;;  %v870_v49 = vpop.permute.xlu0 %869 }
 0x133   : > { %v780_v30 = vadd.s32 %v764_v1, %v748_v27  ;;  %v781_v29 = vadd.s32 %v765_v55, %v749_v15  ;;  %v738_v51 = vshra.s32 %v706_v18, 13  ;;  %v739_v23 = vshra.s32 %v707_v61, 13 }
 0x134   : > { %1063 = vst [vmem:[%s2067_s30 + $0x20] sm:$0xff] %v838_v22  ;;  %1064 = vst [vmem:[%s2067_s30 + $0x28] sm:$0xff] %v841_v11  ;;  %v1129_v43 = vcvt.f32.s32 %v1128_v48  ;;  %v1131_v6 = vcvt.f32.s32 %v1130_v19  ;;  %v770_v46 = vadd.s32 4095, %v706_v18  ;;  %v771_v4 = vadd.s32 4095, %v707_v61 }
 0x135   : > { %v796_v58 = vand.u32 4294959104, %v780_v30  ;;  %v797_v12 = vand.u32 4294959104, %v781_v29  ;;  %v754_v24 = vand.u32 1, %v738_v51  ;;  %v755_v3 = vand.u32 1, %v739_v23 }
 0x136   : > { %v650_v45 = vsel %vm462_vm10, %v2162_v37, %v2238_v39  ;;  %v658_v59 = vsel %vm462_vm10, %v2238_v39, %v2162_v37  ;;  %v886_v2 = vsel %vm563_vm13, %v2246_v9, %v872_v36  ;;  %v894_v63 = vsel %vm563_vm13, %v872_v36, %v2246_v9 }
 0x137   : > { %v1124_v33 = vtrunc.f32 %v796_v58  ;;  %v1126_v7 = vtrunc.f32 %v797_v12  ;;  %v786_v1 = vadd.s32 %v770_v46, %v754_v24  ;;  %v787_v55 = vadd.s32 %v771_v4, %v755_v3  ;;  %v874_v24 = vpop.permute.xlu0 %873 }
 0x138   : > { %v672_v56 = vsel %vm1980_vm11, %v658_v59, %v1807_v14  ;;  %v673_v37 = vsel %vm1984_vm12, %v650_v45, %v1874_v8  ;;  %v903_v39 = vsel %vm1980_vm11, %v1721_v25, %v886_v2  ;;  %v904_v9 = vsel %vm1984_vm12, %v1826_v35, %v894_v63  ;;  %v876_v35 = vpop.permute.xlu1 %875 }
 0x139   : > { %v1125_v0 = vcvt.f32.s32 %v1124_v33  ;;  %v1127_v20 = vcvt.f32.s32 %v1126_v7  ;;  %v802_v27 = vand.u32 4294959104, %v786_v1  ;;  %v803_v15 = vand.u32 4294959104, %v787_v55 }
 0x13a   : > { %v688_v18 = vmul.f32 0.5, %v672_v56  ;;  %v689_v61 = vmul.f32 0.5, %v673_v37  ;;  %v1144_v22 = vtrunc.f32 %v903_v39  ;;  %v1146_v11 = vtrunc.f32 %v904_v9 }
 0x13b   : > { %v2342_v48 = vpack.c.b16 %v1129_v43, %v1125_v0  ;;  %v2344_v19 = vpack.c.b16 %v1131_v6, %v1127_v20  ;;  %v1136_v30 = vtrunc.f32 %v802_v27  ;;  %v1138_v29 = vtrunc.f32 %v803_v15 }
 0x13c   : > { %v704_v25 = vadd.f32 %v688_v18, %v2214_v13  ;;  %v705_v51 = vadd.f32 %v689_v61, %v2216_v28  ;;  %v1145_v23 = vcvt.f32.s32 %v1144_v22  ;;  %v1147_v36 = vcvt.f32.s32 %v1146_v11  ;;  %v880_v9 = vpop.permute.xlu1 %879 }
 0x13d   : > { %v885_v46 = vsel %vm563_vm13, %v2248_v54, %v870_v49  ;;  %v893_v43 = vsel %vm563_vm13, %v870_v49, %v2248_v54  ;;  %v888_v3 = vsel %vm563_vm13, %v2258_v53, %v876_v35  ;;  %v896_v54 = vsel %vm563_vm13, %v876_v35, %v2258_v53 }
 0x13e   : > { %v736_v4 = vshra.s32 %v704_v25, 13  ;;  %v737_v6 = vshra.s32 %v705_v51, 13  ;;  %v768_v58 = vadd.s32 4095, %v704_v25  ;;  %v769_v12 = vadd.s32 4095, %v705_v51 }
 0x13f   : > { %v901_v13 = vsel %vm1980_vm11, %v1730_v32, %v885_v46  ;;  %v902_v28 = vsel %vm1984_vm12, %v1831_v40, %v893_v43  ;;  %v907_v32 = vsel %vm1980_vm11, %v1748_v44, %v888_v3  ;;  %v908_v40 = vsel %vm1984_vm12, %v1840_v52, %v896_v54 }
 0x140   : > { %v752_v45 = vand.u32 1, %v736_v4  ;;  %v753_v59 = vand.u32 1, %v737_v6  ;;  %v1140_v2 = vtrunc.f32 %v901_v13  ;;  %v1142_v63 = vtrunc.f32 %v902_v28  ;;  %v884_v3 = vpop.permute.xlu1 %883 }
 0x141   : > { %v887_v33 = vsel %vm563_vm13, %v2270_v38, %v874_v24  ;;  %v895_v53 = vsel %vm563_vm13, %v874_v24, %v2270_v38  ;;  %v1137_v7 = vcvt.f32.s32 %v1136_v30  ;;  %v1139_v1 = vcvt.f32.s32 %v1138_v29  ;;  %v878_v38 = vpop.permute.xlu0 %877 }
 0x142   : > { %v784_v55 = vadd.s32 %v768_v58, %v752_v45  ;;  %v785_v56 = vadd.s32 %v769_v12, %v753_v59  ;;  %v1152_v37 = vtrunc.f32 %v907_v32  ;;  %v1154_v39 = vtrunc.f32 %v908_v40 }
 0x143   : > { %v905_v44 = vsel %vm1980_vm11, %v1758_v50, %v887_v33  ;;  %v906_v52 = vsel %vm1984_vm12, %v1845_v42, %v895_v53  ;;  %v1141_v20 = vcvt.f32.s32 %v1140_v2  ;;  %v1143_v27 = vcvt.f32.s32 %v1142_v63 }
 0x144   : > { %v800_v49 = vand.u32 4294959104, %v784_v55  ;;  %v801_v0 = vand.u32 4294959104, %v785_v56  ;;  %v1153_v15 = vcvt.f32.s32 %v1152_v37  ;;  %v1155_v18 = vcvt.f32.s32 %v1154_v39 }
 0x145   : > { %v1148_v61 = vtrunc.f32 %v905_v44  ;;  %v1150_v22 = vtrunc.f32 %v906_v52  ;;  %v890_v50 = vsel %vm563_vm13, %v2286_v5, %v880_v9  ;;  %v898_v42 = vsel %vm563_vm13, %v880_v9, %v2286_v5 }
 0x146   : > { %v1132_v11 = vtrunc.f32 %v800_v49  ;;  %v1134_v30 = vtrunc.f32 %v801_v0  ;;  %v911_v51 = vsel %vm1980_vm11, %v1788_v62, %v890_v50  ;;  %v912_v35 = vsel %vm1984_vm12, %v1856_v34, %v898_v42 }
 0x147   : > { %v1149_v29 = vcvt.f32.s32 %v1148_v61  ;;  %v1151_v25 = vcvt.f32.s32 %v1150_v22  ;;  %v933_v4 = vpack.c.b16 %v1145_v23, %v1141_v20  ;;  %v936_v6 = vpack.c.b16 %v1147_v36, %v1143_v27  ;;  %v882_v23 = vpop.permute.xlu0 %881 }
 0x148   : > { %v1133_v46 = vcvt.f32.s32 %v1132_v11  ;;  %v1135_v43 = vcvt.f32.s32 %v1134_v30  ;;  %v889_v5 = vsel %vm563_vm13, %v2302_v26, %v878_v38  ;;  %v897_v24 = vsel %vm563_vm13, %v878_v38, %v2302_v26 }
 0x149   : > { %v934_v58 = vpack.c.b16 %v1153_v15, %v1149_v29  ;;  %v937_v12 = vpack.c.b16 %v1155_v18, %v1151_v25  ;;  %v1160_v28 = vtrunc.f32 %v911_v51  ;;  %v1162_v34 = vtrunc.f32 %v912_v35 }
 0x14a   : > { %v843_v62 = vpack.c.b16 %v1137_v7, %v1133_v46  ;;  %v846_v13 = vpack.c.b16 %v1139_v1, %v1135_v43  ;;  %v909_v45 = vsel %vm1980_vm11, %v1793_v10, %v889_v5  ;;  %v910_v59 = vsel %vm1984_vm12, %v1861_v17, %v897_v24 }
 0x14b   : > { %v935_v36 = vpack.c.b8 %v934_v58, %v933_v4  ;;  %v938_v54 = vpack.c.b8 %v937_v12, %v936_v6  ;;  %v1156_v63 = vtrunc.f32 %v909_v45  ;;  %v1158_v32 = vtrunc.f32 %v910_v59 }
 0x14c   : > { %v844_v26 = vpack.c.b8 %v843_v62, %v2342_v48  ;;  %v847_v2 = vpack.c.b8 %v846_v13, %v2344_v19  ;;  %v892_v40 = vsel %vm563_vm13, %v2306_v16, %v884_v3  ;;  %v900_v10 = vsel %vm563_vm13, %v884_v3, %v2306_v16 }
 0x14d   : > { %1067 = vst [vmem:[%s2067_s30 + $0x40] sm:$0xff] %v935_v36  ;;  %1068 = vst [vmem:[%s2067_s30 + $0x48] sm:$0xff] %v938_v54  ;;  %v891_v17 = vsel %vm563_vm13, %v2312_v41, %v882_v23  ;;  %v899_v48 = vsel %vm563_vm13, %v882_v23, %v2312_v41  ;;  %v1161_v19 = vcvt.f32.s32 %v1160_v28  ;;  %v1163_v33 = vcvt.f32.s32 %v1162_v34 }
 0x14e   : > { %1065 = vst [vmem:[%s2067_s30 + $0x30] sm:$0xff] %v844_v26  ;;  %1066 = vst [vmem:[%s2067_s30 + $0x38] sm:$0xff] %v847_v2  ;;  %v915_v53 = vsel %vm1980_vm11, %v1802_v21, %v892_v40  ;;  %v916_v16 = vsel %vm1984_vm12, %v1870_v31, %v900_v10  ;;  %v913_v47 = vsel %vm1980_vm11, %v1807_v14, %v891_v17  ;;  %v1157_v55 = vcvt.f32.s32 %v1156_v63 }
 0x14f   : > { %v1168_v7 = vtrunc.f32 %v915_v53  ;;  %v1170_v1 = vtrunc.f32 %v916_v16  ;;  %v914_v41 = vsel %vm1984_vm12, %v1874_v8, %v899_v48  ;;  %v1159_v56 = vcvt.f32.s32 %v1158_v32 }
 0x150   : > { %v1164_v37 = vtrunc.f32 %v913_v47  ;;  %v1166_v39 = vtrunc.f32 %v914_v41  ;;  %v939_v57 = vpack.c.b16 %v1161_v19, %v1157_v55 }
 0x151   : > { %v1169_v21 = vcvt.f32.s32 %v1168_v7  ;;  %v1171_v44 = vcvt.f32.s32 %v1170_v1  ;;  %v942_v14 = vpack.c.b16 %v1163_v33, %v1159_v56 }
 0x152   : > { %v1165_v31 = vcvt.f32.s32 %v1164_v37  ;;  %v1167_v52 = vcvt.f32.s32 %v1166_v39 }
 0x154   : > { %v940_v9 = vpack.c.b16 %v1169_v21, %v1165_v31  ;;  %v943_v49 = vpack.c.b16 %v1171_v44, %v1167_v52 }
 0x156   : > { %v941_v8 = vpack.c.b8 %v940_v9, %v939_v57  ;;  %v944_v60 = vpack.c.b8 %v943_v49, %v942_v14 }
 0x158   : > { %1069 = vst [vmem:[%s2067_s30 + $0x50] sm:$0xff] %v941_v8  ;;  %1070 = vst [vmem:[%s2067_s30 + $0x58] sm:$0xff] %v944_v60 }
 0x159   : > { %1284 = shalt.err (!%p1281_p5)
}
 0x15a   : > { %s1285_s24 = scalar_lea.hbm %s2443_s15, 1536  ;;  %s1289_s3 = scalar_lea.hbm %s2497_s1, 3072 }
 0x15b   : > { %p1286_p4 = scmp.ne.s32.totalorder %s2443_s15, %s1285_s24  ;;  %p1290_p12 = scmp.lt.u32.totalorder %s2443_s15, %s2497_s1 }
 0x15c   : > { %p1291_p1 = scmp.lt.u32.totalorder %s1289_s3, %s1285_s24  ;;  %p1293_p8 = scmp.lt.u32.totalorder %s1285_s24, %s2443_s15 }
 0x15d   : > { %p1287_p7 = pnand %p1286_p4, %p2525_p9 }
 0x15e   : > { %p1292_p3 = por %p1291_p1, %p1290_p12 }
 0x15f   : > { %p1288_p10 = pneg %p1287_p7 }
 0x160   : > { %p1294_p11 = por %p1293_p8, %p1292_p3 }
 0x162   : > { %p1295_p0 = pnand %p1294_p11, %p1288_p10 }
 0x164   : > { %1298 = shalt.err (!%p1295_p0)
}
 0x165   : > { %s1361_s27 = smov 256   ;;  %s1362_s29 = smov 16  }
 0x166   : > { %1175 = dma.vmem_to_hbm [thread:$0]  (%p2525_p9), %s2445_s5, 1536, %s2443_s15, %s951_s9, %s1361_s27, %s1361_s27, %s1362_s29  }
 0x167 PF: > { %s982_s30 = sand.u32 1, %s1333_s6   ;;  %p2526_p6 = scmp.ne.s32.totalorder %s2502_s21, 0 }
 0x168   : > { %p2527_p13 = scmp.ge.s32.totalorder %s1353_s11, 2  ;;  %s983_s2 = scalar_lea.sflag [#allocation4], %s982_s30 }
 0x16a   : > { %p1182_p2 = pnand %p2527_p13, %p2526_p6 }
 0x16c   : > { %1328 = dma.done.wait (!%p1182_p2), %s983_s2, 1536  }
 0x16d   : > { %1330 = vsyncadd (!%p1182_p2), %s983_s2, 4294965760  ;;  %s17_s11 = sadd.s32 1, %s1353_s11   ;;  %s2528_s6 = smov %s1337_s7 }
 0x16e   : > { %p14_p5 = scmp.ge.s32.totalorder %s17_s11, 4   ;;  %s2529_s7 = smov %s1341_s8 }
 0x16f   : > { %s2530_s8 = smov %s1429_s20  ;;  %s2531_s9 = smov %s1349_s10 }
 0x170   : > { %s2532_s10 = smov %s2534_s14  ;;  %16 = sbr.rel (!%p14_p5) target bundleno = 6 (0x6), region = 71 }
 0x177   :  { %988 = vsyncpa [#allocation3], 1 }
 0x178   :  { %990 = vsyncpa [#allocation3 + $0x1], 1 }
 0x179   :  { %991 = vsyncpa [#allocation4], 1 }
 0x17a   :  { %993 = vsyncpa [#allocation4 + $0x1], 1 }

</bundles_post_ra>
